<compile_context>
chip_gen: v6e
topology: v6e:2x2x1
jax: 0.10.0
libtpu: 0.0.40
codegen_flags: <defaults>
</compile_context>

<pallas_src>
import functools

import jax
import jax.numpy as jnp
from jax.experimental import pallas as pl
from jax.experimental.pallas import tpu as pltpu


def _round_up(x, m):
    return (x + m - 1) // m * m


def _patch_embed_kernel(x_ref, w_ref, posb_ref, o_ref, *, tiles_per_batch, block_n):
    # x_ref:    (block_n, Kp)  bf16 patch rows (rows = flattened batch*patches)
    # w_ref:    (Kp, Ep)       bf16 projection weight (VMEM-resident)
    # posb_ref: (N_pad, Ep)    f32  pos_embedding + conv bias (VMEM-resident)
    # o_ref:    (block_n, Ep)  f32  output rows
    t = pl.program_id(0)
    y = jnp.dot(x_ref[...], w_ref[...], preferred_element_type=jnp.float32)
    # Row-offset of this tile inside one batch element's patch sequence.
    off = pl.multiple_of((t % tiles_per_batch) * block_n, block_n)
    y = y + posb_ref[pl.ds(off, block_n), :]
    # Dropout: identity (eval mode).
    o_ref[...] = y.astype(o_ref.dtype)


@functools.partial(jax.jit, static_argnames=("patch_size", "block_n"))
def patch_embedding(x, conv_w, conv_b, pos_emb, *, patch_size, block_n=None):
    """PatchEmbedding forward.

    x:       (B, C, H, W)
    conv_w:  (E, C, P, P)   nn.Conv2d weight (kernel=stride=P)
    conv_b:  (E,)           nn.Conv2d bias
    pos_emb: (1, N, E)      learnable positional embedding, N = (H//P)*(W//P)
    returns  (B, N, E)
    """
    B, C, Himg, Wimg = x.shape
    P = patch_size
    nh, nw = Himg // P, Wimg // P
    N = nh * nw
    E = conv_w.shape[0]
    K = C * P * P

    if block_n is None:
        # Multiple of 16 (bf16 sublanes); cap at 256 rows per step.
        # (On v7x with plenty of VMEM headroom, 512 is a good choice too.)
        block_n = min(_round_up(N, 16), 256)
    assert block_n % 16 == 0, "block_n must be a multiple of 16 (bf16 sublanes)"

    # Lane-dense padded sizes.
    Kp = _round_up(K, 128)
    Ep = _round_up(E, 128)
    N_pad = _round_up(N, block_n)
    tiles_per_batch = N_pad // block_n
    rows = B * N_pad
    num_tiles = rows // block_n

    # ---- layout plumbing (outside the kernel, one fused pass each) ---------
    # im2row: (B, C, H, W) -> (B, N, K) with K flattened channel-major to match
    # Conv2d's (E, C, P, P) weight flattening; cast to bf16 in the same
    # expression so XLA fuses transpose+cast(+pad) into a single pass.
    patches = (x.reshape(B, C, nh, P, nw, P)
                 .transpose(0, 2, 4, 1, 3, 5)        # (B, nh, nw, C, P, P)
                 .reshape(B, N, K)
                 .astype(jnp.bfloat16))
    if N_pad != N or Kp != K:
        patches = jnp.pad(patches, ((0, 0), (0, N_pad - N), (0, Kp - K)))
    patches = patches.reshape(rows, Kp)

    # Projection weight: (E, C, P, P) -> (K, E), bf16, lane-padded.
    w = conv_w.reshape(E, K).T.astype(jnp.bfloat16)
    if Kp != K or Ep != E:
        w = jnp.pad(w, ((0, Kp - K), (0, Ep - E)))

    # Positional embedding pre-combined with the conv bias (f32, added after
    # the f32 accumulation inside the kernel).  Stays fully VMEM-resident.
    posb = (pos_emb.reshape(N, E) + conv_b.reshape(1, E)).astype(jnp.float32)
    if N_pad != N or Ep != E:
        posb = jnp.pad(posb, ((0, N_pad - N), (0, Ep - E)))

    out_dtype = x.dtype
    cost = pl.CostEstimate(
        flops=2 * rows * Kp * Ep,
        transcendentals=0,
        bytes_accessed=(patches.size * patches.dtype.itemsize
                        + w.size * w.dtype.itemsize
                        + posb.size * posb.dtype.itemsize      # read once (resident)
                        + rows * Ep * jnp.dtype(out_dtype).itemsize),
    )

    kernel = functools.partial(_patch_embed_kernel,
                               tiles_per_batch=tiles_per_batch,
                               block_n=block_n)

    out = pl.pallas_call(
        kernel,
        out_shape=jax.ShapeDtypeStruct((rows, Ep), out_dtype),
        grid_spec=pltpu.PrefetchScalarGridSpec(
            num_scalar_prefetch=0,
            grid=(num_tiles,),
            in_specs=[
                pl.BlockSpec((block_n, Kp), lambda t: (t, 0)),   # patch rows
                pl.BlockSpec((Kp, Ep), lambda t: (0, 0)),        # weight (resident)
                pl.BlockSpec((N_pad, Ep), lambda t: (0, 0)),     # pos+bias (resident)
            ],
            out_specs=pl.BlockSpec((block_n, Ep), lambda t: (t, 0)),
        ),
        compiler_params=pltpu.CompilerParams(
            dimension_semantics=("parallel",)),
        cost_estimate=cost,
    )(patches, w, posb)

    # Single final un-pad pass (no-op when N, E are already aligned).
    return out.reshape(B, N_pad, Ep)[:, :N, :E]


def init_patch_embedding_params(key, img_size, patch_size, in_channels,
                                embed_dim, dtype=jnp.float32):
    """Deterministic synthetic init mimicking nn.Conv2d / nn.Parameter."""
    num_patches = (img_size // patch_size) ** 2
    fan_in = in_channels * patch_size * patch_size
    bound = 1.0 / (fan_in ** 0.5)
    kw, kb, kp = jax.random.split(key, 3)
    conv_w = jax.random.uniform(
        kw, (embed_dim, in_channels, patch_size, patch_size), dtype, -bound, bound)
    conv_b = jax.random.uniform(kb, (embed_dim,), dtype, -bound, bound)
    pos_emb = jax.random.normal(kp, (1, num_patches, embed_dim), dtype)
    return conv_w, conv_b, pos_emb


if __name__ == "__main__":
    img_size, patch_size, in_channels, embed_dim = 16, 4, 4, 32
    batch = 2
    num_patches = (img_size // patch_size) ** 2          # 16

    key = jax.random.PRNGKey(0)
    kx, kp = jax.random.split(key)
    x = jax.random.normal(kx, (batch, in_channels, img_size, img_size), jnp.float32)
    conv_w, conv_b, pos_emb = init_patch_embedding_params(
        kp, img_size, patch_size, in_channels, embed_dim)

    # Default block_n -> 16 here, so the grid has B*N/16 = 2 parallel tiles.
    out = patch_embedding(x, conv_w, conv_b, pos_emb, patch_size=patch_size)
    out = jax.block_until_ready(out)

    # Reference: Conv2d(k=s=P) -> flatten(2).transpose(1,2) -> + pos_emb
    # (dropout is identity in eval mode).  Reference is f32; the kernel uses
    # bf16 MXU operands with f32 accumulation, hence the looser tolerance.
    ref = jax.lax.conv_general_dilated(
        x, conv_w, window_strides=(patch_size, patch_size), padding="VALID",
        dimension_numbers=("NCHW", "OIHW", "NCHW"),
        precision=jax.lax.Precision.HIGHEST)
    ref = ref + conv_b.reshape(1, embed_dim, 1, 1)
    ref = ref.reshape(batch, embed_dim, num_patches).transpose(0, 2, 1) + pos_emb

    assert out.shape == (batch, num_patches, embed_dim)
    assert jnp.allclose(out, ref, atol=5e-2, rtol=5e-2), \
        float(jnp.max(jnp.abs(out - ref)))

    print("KERNEL_OK")
</pallas_src>

<mosaic_0001>
module attributes {stable_mosaic.version = 11 : i64} {
  func.func @_patch_embed_kernel(%arg0: i32, %arg1: memref<16x128xbf16, #tpu.memory_space<vmem>>, %arg2: memref<128x128xbf16, #tpu.memory_space<vmem>>, %arg3: memref<16x128xf32, #tpu.memory_space<vmem>>, %arg4: memref<16x128xf32, #tpu.memory_space<vmem>>) attributes {dimension_semantics = [#tpu.dimension_semantics<parallel>], iteration_bounds = array<i64: 2>, scalar_prefetch = 0 : i64, scratch_operands = 0 : i64, tpu.core_type = #tpu.core_type<tc>, window_params = [{transform_indices = @transform_0, window_bounds = array<i64: 16, 128>}, {pipeline_mode = #tpu.pipeline_mode<synchronous>, transform_indices = @transform_1, window_bounds = array<i64: 128, 128>}, {pipeline_mode = #tpu.pipeline_mode<synchronous>, transform_indices = @transform_2, window_bounds = array<i64: 16, 128>}, {transform_indices = @transform_3, window_bounds = array<i64: 16, 128>}]} {
    %c0 = arith.constant 0 : index
    %c0_0 = arith.constant 0 : index
    %0 = vector.load %arg1[%c0, %c0_0] : memref<16x128xbf16, #tpu.memory_space<vmem>>, vector<16x128xbf16>
    %c0_1 = arith.constant 0 : index
    %c0_2 = arith.constant 0 : index
    %1 = vector.load %arg2[%c0_1, %c0_2] : memref<128x128xbf16, #tpu.memory_space<vmem>>, vector<128x128xbf16>
    %cst = arith.constant dense<0.000000e+00> : vector<16x128xf32>
    %2 = tpu.matmul %0, %1, %cst {dimension_numbers = #tpu.dot_dimension_numbers<[1], [0], [0], [1], [0, 0, 1, 1], [], []>} : vector<16x128xbf16>, vector<128x128xbf16>, vector<16x128xf32> -> vector<16x128xf32>
    %c1_i32 = arith.constant 1 : i32
    %c0_i32 = arith.constant 0 : i32
    %3 = arith.cmpi eq, %c1_i32, %c0_i32 : i32
    %c1_i32_3 = arith.constant 1 : i32
    %4 = arith.select %3, %c1_i32_3, %c1_i32 : i32
    %5 = arith.remsi %arg0, %4 : i32
    %c0_i32_4 = arith.constant 0 : i32
    %6 = arith.cmpi ne, %5, %c0_i32_4 : i32
    %c0_i32_5 = arith.constant 0 : i32
    %7 = arith.cmpi slt, %5, %c0_i32_5 : i32
    %c0_i32_6 = arith.constant 0 : i32
    %8 = arith.cmpi slt, %4, %c0_i32_6 : i32
    %9 = arith.xori %7, %8 : i1
    %10 = arith.andi %9, %6 : i1
    %11 = arith.addi %5, %4 : i32
    %12 = arith.select %10, %11, %5 : i32
    %c16_i32 = arith.constant 16 : i32
    %13 = arith.muli %12, %c16_i32 : i32
    %14 = tpu.assume_multiple %13, 16 : i32
    %15 = arith.index_cast %14 : i32 to index
    %c0_7 = arith.constant 0 : index
    %16 = vector.load %arg3[%15, %c0_7] : memref<16x128xf32, #tpu.memory_space<vmem>>, vector<16x128xf32>
    %17 = arith.addf %2, %16 : vector<16x128xf32>
    %c0_8 = arith.constant 0 : index
    %c0_9 = arith.constant 0 : index
    %18 = vector.load %arg4[%c0_8, %c0_9] : memref<16x128xf32, #tpu.memory_space<vmem>>, vector<16x128xf32>
    tpu.vector_store %arg4[%c0_8, %c0_9], %17 {strides = array<i32>} : memref<16x128xf32, #tpu.memory_space<vmem>>, vector<16x128xf32>,
    return
  }
  func.func @transform_0(%arg0: i32) -> (i32, i32) {
    %c0_i32 = arith.constant 0 : i32
    %c0_i32_0 = arith.constant 0 : i32
    return %arg0, %c0_i32 : i32, i32
  }
  func.func @transform_1(%arg0: i32) -> (i32, i32) {
    %c0_i32 = arith.constant 0 : i32
    %c0_i32_0 = arith.constant 0 : i32
    %c0_i32_1 = arith.constant 0 : i32
    return %c0_i32, %c0_i32_0 : i32, i32
  }
  func.func @transform_2(%arg0: i32) -> (i32, i32) {
    %c0_i32 = arith.constant 0 : i32
    %c0_i32_0 = arith.constant 0 : i32
    %c0_i32_1 = arith.constant 0 : i32
    return %c0_i32, %c0_i32_0 : i32, i32
  }
  func.func @transform_3(%arg0: i32) -> (i32, i32) {
    %c0_i32 = arith.constant 0 : i32
    %c0_i32_0 = arith.constant 0 : i32
    return %arg0, %c0_i32 : i32, i32
  }
}

</mosaic_0001>

<bundles_post_ra>
// kernel: patch_embedding.1
= control target key start
LH: loop header
LB: loop body
LE: loop exit
PB: predicated region body
PF: predicated region fallthrough
CT: control target
= control target key end

     0   :  { %8 = vsyncpa [#allocation3], 0  ;;  %s687_s0 = inlined_call_operand.vmem [shape: bf16[32,128], index: 0, kind: input, shape index: {}]   ;;  %s688_s1 = inlined_call_operand.vmem [shape: bf16[128,128], index: 1, kind: input, shape index: {}]   ;;  %s689_s2 = inlined_call_operand.vmem [shape: f32[16,128], index: 2, kind: input, shape index: {}]   ;;  %s690_s3 = inlined_call_operand.hbm [shape: f32[32,128], index: 3, kind: output, shape index: {}]  }
   0x1   :  { %10 = vsyncpa [#allocation3 + $0x1], 0  ;;  %s556_s12 = smov 0   ;;  %s558_s13 = smov 0  }
   0x2   :  { %s560_s14 = smov 0   ;;  %s562_s15 = smov 0  }
   0x3 LB: > { %s577_s16 = sadd.s32 4294967295, %s529_s15   ;;  %s366_s17 = sadd.s32 4294967294, %s529_s15   ;;  %s529_s15 = sphi %s562_s15, %s696_s15   ;;  %s525_s14 = sphi %s560_s14, %s695_s14   ;;  %s521_s13 = sphi %s558_s13, %s694_s13   ;;  %s517_s12 = sphi %s556_s12, %s693_s12  }
   0x4   : > { %s581_s18 = sadd.s32 1, %s529_s15   ;;  %s91_s19 = sadd.s32 1, %s525_s14 }
   0x5   : > { %s88_s20 = ssub.s32 %s529_s15, %s581_s18  ;;  %p101_p0 = scmp.ne.s32.totalorder %s525_s14, %s521_s13 }
   0x6   : > { %p89_p1 = scmp.eq.s32.totalorder %s88_s20, 0  ;;  %p102_p2 = scmp.eq.s32.totalorder %s577_s16, 1 }
   0x7   : > { %p107_p3 = scmp.ne.s32.totalorder %s521_s13, %s517_s12  ;;  %p108_p4 = scmp.eq.s32.totalorder %s366_s17, 1 }
   0x8   : > { %s592_s21 = scalar_select %p89_p1, %s525_s14, %s91_s19  }
   0x9   : > { %p594_p5 = por %p102_p2, %p101_p0  ;;  %p598_p6 = por %p108_p4, %p107_p3 }
   0xa   : > { %p369_p7 = scmp.ge.s32.totalorder %s529_s15, 1  ;;  %p141_p8 = scmp.lt.s32.totalorder %s529_s15, 3 }
   0xc   : > { %p142_p9 = pnand %p369_p7, %p141_p8 }
   0xd   : > { %s371_s28 = sshll.u32 (!%p142_p9), %s577_s16, 1  ;;  %s162_s27 = sand.u32 (!%p142_p9), 1, %s521_s13  }
   0xe   : > { %145 = sbr.rel (%p142_p9) target bundleno = 265 (0x109), region = 32  ;;  %p166_p10 = scmp.lt.s32.totalorder (!%p142_p9), %s371_s28, 3 }
   0xf   : > { %s387_s6 = sshll.u32 (!%p142_p9), %s577_s16, 8  ;;  %s647_s16 = scalar_lea.sflag (!%p142_p9), [#allocation3], %s162_s27 }
  0x10   : > { %s645_s11 = scalar_lea.hbm (!%p142_p9), %s690_s3, %s387_s6  ;;  %s533_s19 = smov (!%p142_p9), [#allocation2]  }
  0x11   : > { %s473_s20 = sshll.u32 (!%p142_p9), %s533_s19, 4  ;;  %s474_s20 = int_to_ptr.vmem [resolvable:$false] %s473_s20 }
  0x12   : > { %s475_s24 = scalar_lea.vmem (!%p142_p9), %s474_s20, 512 }
  0x13   : > { %v460_v0 = vld [vmem:[%s688_s1 + $0x38] sm:$0xff]   ;;  %v531_v1 = vmov 0.0   ;;  %v461_v2 = vld [vmem:[%s688_s1 + $0x30] sm:$0xff]   ;;  %vm532_vm0 = vmmov 0   ;;  %s698_s28 = smov (!%p166_p10, %s371_s28), 3  ;;  %v462_v3 = vld [vmem:[%s688_s1 + $0x28] sm:$0xff]  }
  0x14   : > { %397 = vmatprep.subr.bf16.mxu0 %v531_v1  ;;  %413 = vmatprep.mubr.msk.bf16.mxu0 %vm532_vm0, %v531_v1  ;;  %s372_s4 = sshll.u32 %s698_s28, 2  ;;  %v463_v4 = vld [vmem:[%s688_s1 + $0x20] sm:$0xff]   ;;  %v464_v5 = vld [vmem:[%s688_s1 + $0x18] sm:$0xff]   ;;  %v465_v6 = vld [vmem:[%s688_s1 + $0x10] sm:$0xff]   ;;  %s370_s28 = sshll.u32 %s162_s27, 4 }
  0x15   : > { %398 = vmatpush3.bf16.msra.mxu0 %v460_v0  ;;  %s169_s7 = scalar_lea.vmem %s687_s0, %s372_s4  ;;  %v466_v7 = vld [vmem:[%s688_s1 + $0x8] sm:$0xff]   ;;  %v467_v8 = vld [vmem:[%s688_s1] sm:$0xff]   ;;  %s164_s4 = scalar_lea.vmem [#allocation2], %s370_s28 }
  0x16   : > { %399 = vmatprep.subr.bf16.mxu0 %v531_v1  ;;  %v468_v9 = vld [vmem:[%s169_s7] sm:$0xff]   ;;  %s304_s5 = sshll.u32 %s164_s4, 4  ;;  %v192_v14 = vld [vmem:[%s689_s2 + $0x8] sm:$0xff]  ;;  %s640_s5 = int_to_ptr.vmem [resolvable:$true] %s304_s5 }
  0x17   : > { %v191_v10 = vld [vmem:[%s689_s2] sm:$0xff]  ;;  %s469_s17 = scalar_lea.vmem %s640_s5, 256  ;;  %p476_p0 = scmp.lt.s32.totalorder %s640_s5, %s474_s20 }
  0x18   : > { %p470_p11 = scmp.ne.s32.totalorder %s640_s5, %s469_s17  ;;  %p477_p1 = scmp.lt.s32.totalorder %s475_s24, %s469_s17 }
  0x19   : > { %400 = vmatpush3.bf16.msra.mxu0 %v461_v2 }
  0x1a   : > { %401 = vmatprep.subr.bf16.mxu0 %v531_v1  ;;  %p471_p12 = pnand %p470_p11, %p594_p5  ;;  %p478_p2 = por %p477_p1, %p476_p0 }
  0x1c   : > { %p472_p13 = pneg %p471_p12 }
  0x1d   : > { %402 = vmatpush3.bf16.msra.mxu0 %v462_v3 }
  0x1e   : > { %403 = vmatprep.subr.bf16.mxu0 %v531_v1  ;;  %p479_p3 = pnand %p478_p2, %p472_p13 }
  0x21   : > { %404 = vmatpush3.bf16.msra.mxu0 %v463_v4 }
  0x22   : > { %405 = vmatprep.subr.bf16.mxu0 %v531_v1 }
  0x25   : > { %406 = vmatpush3.bf16.msra.mxu0 %v464_v5 }
  0x26   : > { %407 = vmatprep.subr.bf16.mxu0 %v531_v1 }
  0x29   : > { %408 = vmatpush3.bf16.msra.mxu0 %v465_v6 }
  0x2a   : > { %409 = vmatprep.subr.bf16.mxu0 %v531_v1 }
  0x2d   : > { %410 = vmatpush3.bf16.msra.mxu0 %v466_v7 }
  0x2e   : > { %411 = vmatprep.subr.bf16.mxu0 %v531_v1 }
  0x31   : > { %412 = vmatpush3.bf16.msra.mxu0 %v467_v8 }
  0x34   : > { %414 = vmatmul.mubr.bf16.vlgmr.msra.gmra.mxu0 %v468_v9 }
  0xf4   : > { %v281_v11 = vpop.f32.mrf.mxu0 }
  0xf5   : > { %v282_v12 = vadd.f32 %v281_v11, %v191_v10 }
  0xf6   : > { %v415_v13 = vpop.f32.mrf.mxu0 }
  0xf7   : > { %288 = vst [vmem:[%s164_s4] sm:$0xff] %v282_v12 }
  0xf8   : > { %v284_v15 = vpop.f32.mrf.mxu0 }
  0xf9   : > { %v285_v16 = vadd.f32 %v284_v15, %v192_v14 }
  0xfa   : > { %v416_v17 = vpop.f32.mrf.mxu0 }
  0xfb   : > { %289 = vst [vmem:[%s164_s4 + $0x8] sm:$0xff] %v285_v16 }
  0xfc   : > { %482 = shalt.err (!%p479_p3)
}
  0xfd   : > { %s483_s25 = scalar_lea.hbm %s645_s11, 256  ;;  %s487_s28 = scalar_lea.hbm %s690_s3, 512 }
  0xfe   : > { %p484_p4 = scmp.ne.s32.totalorder %s645_s11, %s483_s25  ;;  %p488_p9 = scmp.lt.s32.totalorder %s645_s11, %s690_s3 }
  0xff   : > { %p489_p10 = scmp.lt.s32.totalorder %s487_s28, %s483_s25 }
 0x100   : > { %p485_p7 = pnand %p484_p4, %p594_p5 }
 0x101   : > { %p490_p11 = por %p489_p10, %p488_p9 }
 0x102   : > { %p486_p8 = pneg %p485_p7 }
 0x104   : > { %p491_p12 = pnand %p490_p11, %p486_p8 }
 0x106   : > { %494 = shalt.err (!%p491_p12)
}
 0x107   : > { %s534_s4 = smov 128   ;;  %s535_s6 = smov 8  }
 0x108   : > { %417 = dma.vmem_to_hbm [thread:$0]  (%p594_p5), %s640_s5, 256, %s645_s11, %s647_s16, %s534_s4, %s534_s4, %s535_s6  }
 0x109 PF: > { %p423_p13 = scmp.ge.s32.totalorder %s529_s15, 2  ;;  %s319_s8 = sand.u32 1, %s517_s12  }
 0x10a   : > { %s320_s9 = scalar_lea.sflag [#allocation3], %s319_s8 }
 0x10b   : > { %p420_p0 = pnand %p423_p13, %p598_p6 }
 0x10d   : > { %p421_p1 = pneg %p420_p0 }
 0x10f   : > { %512 = dma.done.wait (%p421_p1), %s320_s9, 256  }
 0x110   : > { %514 = vsyncadd (%p421_p1), %s320_s9, 4294967040  ;;  %p13_p2 = scmp.ge.s32.totalorder %s581_s18, 4   ;;  %s693_s12 = smov %s521_s13 }
 0x111   : > { %s694_s13 = smov %s525_s14  ;;  %s695_s14 = smov %s592_s21 }
 0x112   : > { %s696_s15 = smov %s581_s18  ;;  %15 = sbr.rel (!%p13_p2) target bundleno = 3 (0x3), region = 67 }
 0x117   :  { %325 = vsyncpa [#allocation3], 1 }
 0x118   :  { %327 = vsyncpa [#allocation3 + $0x1], 1 }

</bundles_post_ra>
